<compile_context>
chip_gen: v5e
topology: v5e:2x2
jax: 0.10.0
libtpu: 0.0.40
codegen_flags: <defaults>
</compile_context>

<pallas_src>
import jax
import jax.numpy as jnp
from jax.experimental import pallas as pl
from jax.experimental.pallas import tpu as pltpu

_SUBLANES = 8
_LANES = 128
_TILE = _SUBLANES * _LANES          # 1024 samples per grid step


def _round_up(n, m):
    return ((n + m - 1) // m) * m


def pack_params(w1, b1, w2, b2):
    """Pack MLP parameters into one flat f32 array (lives in SMEM inside the kernel).

    Layout (H = n_hidden):
      p[0:H]    = W1[0, :]   (hidden weights; n_feature == 1)
      p[H:2H]   = b1
      p[2H:3H]  = W2[:, 0]   (output weights; n_output == 1)
      p[3H]     = b2[0]

    Weights are expected in (in_features, out_features) layout, i.e. the transpose
    of PyTorch's nn.Linear.weight.  Call this ONCE per weight set (hoisted out of
    the forward pass).
    """
    F, H = w1.shape
    O = w2.shape[1]
    assert F == 1 and O == 1, "kernel is specialized to n_feature = n_output = 1"
    return jnp.concatenate([w1[0, :], b1, w2[:, 0], b2]).astype(jnp.float32)


def _make_kernel(H):
    """One grid step: a full (8, 128) tile of the batch; H hidden units unrolled."""

    def kernel(x_ref, p_ref, o_ref):
        x = x_ref[...]                                    # (8, 128) f32 = 1024 samples
        acc = jnp.zeros_like(x)
        for j in range(H):                                # statically unrolled (H = 10)
            h_j = jnp.maximum(x * p_ref[j] + p_ref[H + j], 0.0)   # relu(w1_j*x + b1_j)
            acc = acc + h_j * p_ref[2 * H + j]                    # += w2_j * h_j
        o_ref[...] = (acc + p_ref[3 * H]).astype(o_ref.dtype)     # + b2

    return kernel


def net_forward(x, params):
    """x: (N, 1) f32; params: flat f32 array produced by pack_params()."""
    N, F = x.shape
    assert F == 1, "kernel is specialized to n_feature = 1 (as in the exercise)"
    H = (params.shape[0] - 1) // 3

    Np = _round_up(N, _TILE)
    rows = Np // _LANES

    # Batch on sublanes *and* lanes: pad to Np samples and view as (rows, 128).
    x2 = jnp.zeros((Np,), x.dtype).at[:N].set(x[:, 0]).reshape(rows, _LANES)

    out2 = pl.pallas_call(
        _make_kernel(H),
        out_shape=jax.ShapeDtypeStruct((rows, _LANES), x.dtype),
        grid=(rows // _SUBLANES,),
        in_specs=[
            pl.BlockSpec((_SUBLANES, _LANES), lambda i: (i, 0)),    # x tile (8,128)
            pl.BlockSpec(memory_space=pltpu.MemorySpace.SMEM),      # params as SMEM scalars
        ],
        out_specs=pl.BlockSpec((_SUBLANES, _LANES), lambda i: (i, 0)),
        compiler_params=pltpu.CompilerParams(
            # Only pays off once the grid has >= 2 steps (>= 2048 samples) on v7x;
            # harmless (near-zero impact) at a 1-step grid and on v5e/v6e.
            dimension_semantics=("parallel",),
        ),
    )(x2, params)

    return out2.reshape(Np, 1)[:N, :]


def reference_forward(x, w1, b1, w2, b2):
    h = jnp.maximum(x @ w1 + b1, 0.0)
    return h @ w2 + b2


if __name__ == "__main__":
    # Shapes implied by the exercise: x = linspace(-1, 1, 100).unsqueeze(1)
    # -> n_feature = 1; n_hidden = 10, n_output = 1.
    N, n_feature, n_hidden, n_output = 100, 1, 10, 1

    key = jax.random.PRNGKey(0)
    k1, k2, k3, k4 = jax.random.split(key, 4)

    # Deterministic synthetic parameters, stored in (in, out) layout.
    w1 = jax.random.normal(k1, (n_feature, n_hidden), dtype=jnp.float32) * 0.5
    b1 = jax.random.normal(k2, (n_hidden,), dtype=jnp.float32) * 0.1
    w2 = jax.random.normal(k3, (n_hidden, n_output), dtype=jnp.float32) * 0.5
    b2 = jax.random.normal(k4, (n_output,), dtype=jnp.float32) * 0.1

    # Pack parameters ONCE, outside the forward pass.
    params = pack_params(w1, b1, w2, b2)

    # Input matching the script: x = unsqueeze(linspace(-1, 1, 100), dim=1)
    x = jnp.linspace(-1.0, 1.0, N, dtype=jnp.float32).reshape(N, n_feature)

    y = net_forward(x, params)
    y = jax.block_until_ready(y)

    y_ref = reference_forward(x, w1, b1, w2, b2)
    assert y.shape == (N, n_output)
    assert jnp.allclose(y, y_ref, atol=1e-5, rtol=1e-5)

    print("KERNEL_OK")
</pallas_src>

<mosaic_0001>
module attributes {stable_mosaic.version = 11 : i64} {
  func.func @kernel(%arg0: i32, %arg1: memref<8x128xf32, #tpu.memory_space<vmem>>, %arg2: memref<31xf32, #tpu.memory_space<smem>>, %arg3: memref<8x128xf32, #tpu.memory_space<vmem>>) attributes {dimension_semantics = [#tpu.dimension_semantics<parallel>], iteration_bounds = array<i64: 1>, scalar_prefetch = 0 : i64, scratch_operands = 0 : i64, tpu.core_type = #tpu.core_type<tc>, window_params = [{transform_indices = @transform_0, window_bounds = array<i64: 8, 128>}, {transform_indices = @transform_1, window_bounds = array<i64: 31>}, {transform_indices = @transform_2, window_bounds = array<i64: 8, 128>}]} {
    %c0 = arith.constant 0 : index
    %c0_0 = arith.constant 0 : index
    %0 = vector.load %arg1[%c0, %c0_0] : memref<8x128xf32, #tpu.memory_space<vmem>>, vector<8x128xf32>
    %cst = arith.constant 0.000000e+00 : f32
    %1 = vector.broadcast %cst : f32 to vector<8x128xf32>
    %c0_1 = arith.constant 0 : index
    %2 = memref.load %arg2[%c0_1] : memref<31xf32, #tpu.memory_space<smem>>
    %3 = vector.broadcast %2 : f32 to vector<8x128xf32>
    %4 = arith.mulf %0, %3 : vector<8x128xf32>
    %c10 = arith.constant 10 : index
    %5 = memref.load %arg2[%c10] : memref<31xf32, #tpu.memory_space<smem>>
    %6 = vector.broadcast %5 : f32 to vector<8x128xf32>
    %7 = arith.addf %4, %6 : vector<8x128xf32>
    %cst_2 = arith.constant 0.000000e+00 : f32
    %8 = vector.broadcast %cst_2 : f32 to vector<8x128xf32>
    %9 = arith.maximumf %7, %8 : vector<8x128xf32>
    %c20 = arith.constant 20 : index
    %10 = memref.load %arg2[%c20] : memref<31xf32, #tpu.memory_space<smem>>
    %11 = vector.broadcast %10 : f32 to vector<8x128xf32>
    %12 = arith.mulf %9, %11 : vector<8x128xf32>
    %13 = arith.addf %1, %12 : vector<8x128xf32>
    %c1 = arith.constant 1 : index
    %14 = memref.load %arg2[%c1] : memref<31xf32, #tpu.memory_space<smem>>
    %15 = vector.broadcast %14 : f32 to vector<8x128xf32>
    %16 = arith.mulf %0, %15 : vector<8x128xf32>
    %c11 = arith.constant 11 : index
    %17 = memref.load %arg2[%c11] : memref<31xf32, #tpu.memory_space<smem>>
    %18 = vector.broadcast %17 : f32 to vector<8x128xf32>
    %19 = arith.addf %16, %18 : vector<8x128xf32>
    %cst_3 = arith.constant 0.000000e+00 : f32
    %20 = vector.broadcast %cst_3 : f32 to vector<8x128xf32>
    %21 = arith.maximumf %19, %20 : vector<8x128xf32>
    %c21 = arith.constant 21 : index
    %22 = memref.load %arg2[%c21] : memref<31xf32, #tpu.memory_space<smem>>
    %23 = vector.broadcast %22 : f32 to vector<8x128xf32>
    %24 = arith.mulf %21, %23 : vector<8x128xf32>
    %25 = arith.addf %13, %24 : vector<8x128xf32>
    %c2 = arith.constant 2 : index
    %26 = memref.load %arg2[%c2] : memref<31xf32, #tpu.memory_space<smem>>
    %27 = vector.broadcast %26 : f32 to vector<8x128xf32>
    %28 = arith.mulf %0, %27 : vector<8x128xf32>
    %c12 = arith.constant 12 : index
    %29 = memref.load %arg2[%c12] : memref<31xf32, #tpu.memory_space<smem>>
    %30 = vector.broadcast %29 : f32 to vector<8x128xf32>
    %31 = arith.addf %28, %30 : vector<8x128xf32>
    %cst_4 = arith.constant 0.000000e+00 : f32
    %32 = vector.broadcast %cst_4 : f32 to vector<8x128xf32>
    %33 = arith.maximumf %31, %32 : vector<8x128xf32>
    %c22 = arith.constant 22 : index
    %34 = memref.load %arg2[%c22] : memref<31xf32, #tpu.memory_space<smem>>
    %35 = vector.broadcast %34 : f32 to vector<8x128xf32>
    %36 = arith.mulf %33, %35 : vector<8x128xf32>
    %37 = arith.addf %25, %36 : vector<8x128xf32>
    %c3 = arith.constant 3 : index
    %38 = memref.load %arg2[%c3] : memref<31xf32, #tpu.memory_space<smem>>
    %39 = vector.broadcast %38 : f32 to vector<8x128xf32>
    %40 = arith.mulf %0, %39 : vector<8x128xf32>
    %c13 = arith.constant 13 : index
    %41 = memref.load %arg2[%c13] : memref<31xf32, #tpu.memory_space<smem>>
    %42 = vector.broadcast %41 : f32 to vector<8x128xf32>
    %43 = arith.addf %40, %42 : vector<8x128xf32>
    %cst_5 = arith.constant 0.000000e+00 : f32
    %44 = vector.broadcast %cst_5 : f32 to vector<8x128xf32>
    %45 = arith.maximumf %43, %44 : vector<8x128xf32>
    %c23 = arith.constant 23 : index
    %46 = memref.load %arg2[%c23] : memref<31xf32, #tpu.memory_space<smem>>
    %47 = vector.broadcast %46 : f32 to vector<8x128xf32>
    %48 = arith.mulf %45, %47 : vector<8x128xf32>
    %49 = arith.addf %37, %48 : vector<8x128xf32>
    %c4 = arith.constant 4 : index
    %50 = memref.load %arg2[%c4] : memref<31xf32, #tpu.memory_space<smem>>
    %51 = vector.broadcast %50 : f32 to vector<8x128xf32>
    %52 = arith.mulf %0, %51 : vector<8x128xf32>
    %c14 = arith.constant 14 : index
    %53 = memref.load %arg2[%c14] : memref<31xf32, #tpu.memory_space<smem>>
    %54 = vector.broadcast %53 : f32 to vector<8x128xf32>
    %55 = arith.addf %52, %54 : vector<8x128xf32>
    %cst_6 = arith.constant 0.000000e+00 : f32
    %56 = vector.broadcast %cst_6 : f32 to vector<8x128xf32>
    %57 = arith.maximumf %55, %56 : vector<8x128xf32>
    %c24 = arith.constant 24 : index
    %58 = memref.load %arg2[%c24] : memref<31xf32, #tpu.memory_space<smem>>
    %59 = vector.broadcast %58 : f32 to vector<8x128xf32>
    %60 = arith.mulf %57, %59 : vector<8x128xf32>
    %61 = arith.addf %49, %60 : vector<8x128xf32>
    %c5 = arith.constant 5 : index
    %62 = memref.load %arg2[%c5] : memref<31xf32, #tpu.memory_space<smem>>
    %63 = vector.broadcast %62 : f32 to vector<8x128xf32>
    %64 = arith.mulf %0, %63 : vector<8x128xf32>
    %c15 = arith.constant 15 : index
    %65 = memref.load %arg2[%c15] : memref<31xf32, #tpu.memory_space<smem>>
    %66 = vector.broadcast %65 : f32 to vector<8x128xf32>
    %67 = arith.addf %64, %66 : vector<8x128xf32>
    %cst_7 = arith.constant 0.000000e+00 : f32
    %68 = vector.broadcast %cst_7 : f32 to vector<8x128xf32>
    %69 = arith.maximumf %67, %68 : vector<8x128xf32>
    %c25 = arith.constant 25 : index
    %70 = memref.load %arg2[%c25] : memref<31xf32, #tpu.memory_space<smem>>
    %71 = vector.broadcast %70 : f32 to vector<8x128xf32>
    %72 = arith.mulf %69, %71 : vector<8x128xf32>
    %73 = arith.addf %61, %72 : vector<8x128xf32>
    %c6 = arith.constant 6 : index
    %74 = memref.load %arg2[%c6] : memref<31xf32, #tpu.memory_space<smem>>
    %75 = vector.broadcast %74 : f32 to vector<8x128xf32>
    %76 = arith.mulf %0, %75 : vector<8x128xf32>
    %c16 = arith.constant 16 : index
    %77 = memref.load %arg2[%c16] : memref<31xf32, #tpu.memory_space<smem>>
    %78 = vector.broadcast %77 : f32 to vector<8x128xf32>
    %79 = arith.addf %76, %78 : vector<8x128xf32>
    %cst_8 = arith.constant 0.000000e+00 : f32
    %80 = vector.broadcast %cst_8 : f32 to vector<8x128xf32>
    %81 = arith.maximumf %79, %80 : vector<8x128xf32>
    %c26 = arith.constant 26 : index
    %82 = memref.load %arg2[%c26] : memref<31xf32, #tpu.memory_space<smem>>
    %83 = vector.broadcast %82 : f32 to vector<8x128xf32>
    %84 = arith.mulf %81, %83 : vector<8x128xf32>
    %85 = arith.addf %73, %84 : vector<8x128xf32>
    %c7 = arith.constant 7 : index
    %86 = memref.load %arg2[%c7] : memref<31xf32, #tpu.memory_space<smem>>
    %87 = vector.broadcast %86 : f32 to vector<8x128xf32>
    %88 = arith.mulf %0, %87 : vector<8x128xf32>
    %c17 = arith.constant 17 : index
    %89 = memref.load %arg2[%c17] : memref<31xf32, #tpu.memory_space<smem>>
    %90 = vector.broadcast %89 : f32 to vector<8x128xf32>
    %91 = arith.addf %88, %90 : vector<8x128xf32>
    %cst_9 = arith.constant 0.000000e+00 : f32
    %92 = vector.broadcast %cst_9 : f32 to vector<8x128xf32>
    %93 = arith.maximumf %91, %92 : vector<8x128xf32>
    %c27 = arith.constant 27 : index
    %94 = memref.load %arg2[%c27] : memref<31xf32, #tpu.memory_space<smem>>
    %95 = vector.broadcast %94 : f32 to vector<8x128xf32>
    %96 = arith.mulf %93, %95 : vector<8x128xf32>
    %97 = arith.addf %85, %96 : vector<8x128xf32>
    %c8 = arith.constant 8 : index
    %98 = memref.load %arg2[%c8] : memref<31xf32, #tpu.memory_space<smem>>
    %99 = vector.broadcast %98 : f32 to vector<8x128xf32>
    %100 = arith.mulf %0, %99 : vector<8x128xf32>
    %c18 = arith.constant 18 : index
    %101 = memref.load %arg2[%c18] : memref<31xf32, #tpu.memory_space<smem>>
    %102 = vector.broadcast %101 : f32 to vector<8x128xf32>
    %103 = arith.addf %100, %102 : vector<8x128xf32>
    %cst_10 = arith.constant 0.000000e+00 : f32
    %104 = vector.broadcast %cst_10 : f32 to vector<8x128xf32>
    %105 = arith.maximumf %103, %104 : vector<8x128xf32>
    %c28 = arith.constant 28 : index
    %106 = memref.load %arg2[%c28] : memref<31xf32, #tpu.memory_space<smem>>
    %107 = vector.broadcast %106 : f32 to vector<8x128xf32>
    %108 = arith.mulf %105, %107 : vector<8x128xf32>
    %109 = arith.addf %97, %108 : vector<8x128xf32>
    %c9 = arith.constant 9 : index
    %110 = memref.load %arg2[%c9] : memref<31xf32, #tpu.memory_space<smem>>
    %111 = vector.broadcast %110 : f32 to vector<8x128xf32>
    %112 = arith.mulf %0, %111 : vector<8x128xf32>
    %c19 = arith.constant 19 : index
    %113 = memref.load %arg2[%c19] : memref<31xf32, #tpu.memory_space<smem>>
    %114 = vector.broadcast %113 : f32 to vector<8x128xf32>
    %115 = arith.addf %112, %114 : vector<8x128xf32>
    %cst_11 = arith.constant 0.000000e+00 : f32
    %116 = vector.broadcast %cst_11 : f32 to vector<8x128xf32>
    %117 = arith.maximumf %115, %116 : vector<8x128xf32>
    %c29 = arith.constant 29 : index
    %118 = memref.load %arg2[%c29] : memref<31xf32, #tpu.memory_space<smem>>
    %119 = vector.broadcast %118 : f32 to vector<8x128xf32>
    %120 = arith.mulf %117, %119 : vector<8x128xf32>
    %121 = arith.addf %109, %120 : vector<8x128xf32>
    %c30 = arith.constant 30 : index
    %122 = memref.load %arg2[%c30] : memref<31xf32, #tpu.memory_space<smem>>
    %123 = vector.broadcast %122 : f32 to vector<8x128xf32>
    %124 = arith.addf %121, %123 : vector<8x128xf32>
    %c0_12 = arith.constant 0 : index
    %c0_13 = arith.constant 0 : index
    %125 = vector.load %arg3[%c0_12, %c0_13] : memref<8x128xf32, #tpu.memory_space<vmem>>, vector<8x128xf32>
    tpu.vector_store %arg3[%c0_12, %c0_13], %124 {strides = array<i32>} : memref<8x128xf32, #tpu.memory_space<vmem>>, vector<8x128xf32>,
    return
  }
  func.func @transform_0(%arg0: i32) -> (i32, i32) {
    %c0_i32 = arith.constant 0 : i32
    %c0_i32_0 = arith.constant 0 : i32
    return %arg0, %c0_i32 : i32, i32
  }
  func.func @transform_1(%arg0: i32) -> i32 {
    %c0_i32 = arith.constant 0 : i32
    %c0_i32_0 = arith.constant 0 : i32
    return %c0_i32 : i32
  }
  func.func @transform_2(%arg0: i32) -> (i32, i32) {
    %c0_i32 = arith.constant 0 : i32
    %c0_i32_0 = arith.constant 0 : i32
    return %arg0, %c0_i32 : i32, i32
  }
}

</mosaic_0001>

<bundles_post_ra>
// kernel: tpu_custom_call.1
= control target key start
LH: loop header
LB: loop body
LE: loop exit
PB: predicated region body
PF: predicated region fallthrough
CT: control target
= control target key end

     0   :  { %7 = vsyncpa [#allocation3], 0  ;;  %s331_s0 = inlined_call_operand.hbm [shape: f32[8,128], index: 0, kind: input, shape index: {}]   ;;  %s332_s1 = inlined_call_operand.hbm [shape: f32[31], index: 1, kind: input, shape index: {}]   ;;  %s333_s2 = inlined_call_operand.hbm [shape: f32[8,128], index: 2, kind: output, shape index: {}]  }
   0x1   :  { %8 = vsyncpa [#allocation5], 0 }
   0x2   :  { %9 = vsyncpa [#allocation4], 0  ;;  %s15_s11 = sshll.u32 %s331_s0, 4  ;;  %s271_s12 = smov [#allocation2]   ;;  %s16_s11 = int_to_ptr.hbm [resolvable:$true] %s15_s11 }
   0x3   :  { %s17_s13 = sshll.u32 %s271_s12, 4  ;;  %s26_s16 = sshll.u32 %s332_s1, 4  ;;  %s18_s13 = int_to_ptr.vmem [resolvable:$true] %s17_s13  ;;  %s27_s16 = int_to_ptr.hbm [resolvable:$true] %s26_s16 }
   0x4   :  { %20 = dma.hbm_to_vmem [thread:$0]  %s16_s11, 128, %s18_s13, [#allocation3]  }
   0x5   :  { %s272_s17 = smov [#allocation6]  }
   0x6   :  { %29 = dma.hbm_to_smem %s27_s16, 16, %s272_s17, [#allocation5]  }
   0x7   :  { %265 = dma.done.wait [#allocation3], 128  }
   0x8   :  { %266 = vsyncadd [#allocation3], 4294967168 }
   0x9   :  { %267 = dma.done.wait [#allocation5], 16  }
   0xa   :  { %268 = vsyncadd [#allocation5], 4294967280 }
   0xb   :  { %38 = sfence }
   0xc   :  { %s40_s18 = sld [smem:[#allocation6]]  ;;  %v295_v0 = vld [vmem:[#allocation2] sm:$0xff] }
   0xd   :  { %s172_s19 = sld [smem:[#allocation6 + $0xa]] }
   0xe   :  { %s173_s0 = sld [smem:[#allocation6 + $0x14]] }
   0xf   :  { %s174_s20 = sld [smem:[#allocation6 + $0x1]] }
  0x10   :  { %s175_s21 = sld [smem:[#allocation6 + $0xb]] }
  0x11   :  { %s176_s22 = sld [smem:[#allocation6 + $0x15]] }
  0x12   :  { %v41_v1 = vstv %s40_s18  ;;  %s177_s23 = sld [smem:[#allocation6 + $0x2]] }
  0x13   :  { %v42_v2 = vmul.f32 %v41_v1, %v295_v0  ;;  %v44_v3 = vstv %s172_s19  ;;  %s178_s1 = sld [smem:[#allocation6 + $0xc]]  ;;  %s273_s19 = smov [#allocation7]  }
  0x14   :  { %s298_s24 = sld [smem:[#allocation6 + $0x16]]  ;;  %v48_v9 = vstv %s173_s0  ;;  %s159_s0 = sshll.u32 %s273_s19, 4  ;;  %s160_s0 = int_to_ptr.vmem [resolvable:$true] %s159_s0 }
  0x15   :  { %v45_v4 = vadd.f32 %v44_v3, %v42_v2  ;;  %v52_v5 = vstv %s174_s20  ;;  %s180_s25 = sld [smem:[#allocation6 + $0x3]] }
  0x16   :  { %v53_v6 = vmul.f32 %v52_v5, %v295_v0  ;;  %v55_v7 = vstv %s175_s21  ;;  %s181_s26 = sld [smem:[#allocation6 + $0xd]] }
  0x17   :  { %v46_v8 = vmax.f32 %v45_v4, 0.0  ;;  %s301_s27 = sld [smem:[#allocation6 + $0x17]]  ;;  %v59_v12 = vstv %s176_s22  ;;  %s161_s22 = sshll.u32 %s333_s2, 4  ;;  %s162_s22 = int_to_ptr.hbm [resolvable:$true] %s161_s22 }
  0x18   :  { %v56_v10 = vadd.f32 %v55_v7, %v53_v6  ;;  %v63_v11 = vstv %s177_s23  ;;  %s183_s28 = sld [smem:[#allocation6 + $0x4]] }
  0x19   :  { %v64_v13 = vmul.f32 %v63_v11, %v295_v0  ;;  %v66_v14 = vstv %s178_s1  ;;  %s184_s29 = sld [smem:[#allocation6 + $0xe]]  ;;  %v49_v15 = vmul.f32 %v48_v9, %v46_v8 }
  0x1a   :  { %v57_v16 = vmax.f32 %v56_v10, 0.0  ;;  %s304_s30 = sld [smem:[#allocation6 + $0x18]]  ;;  %v70_v20 = vstv %s298_s24 }
  0x1b   :  { %v67_v17 = vadd.f32 %v66_v14, %v64_v13  ;;  %v74_v18 = vstv %s180_s25  ;;  %s186_s3 = sld [smem:[#allocation6 + $0x5]] }
  0x1c   :  { %v60_v19 = vmul.f32 %v59_v12, %v57_v16  ;;  %v75_v21 = vmul.f32 %v74_v18, %v295_v0  ;;  %v77_v22 = vstv %s181_s26  ;;  %s187_s4 = sld [smem:[#allocation6 + $0xf]] }
  0x1d   :  { %v68_v23 = vmax.f32 %v67_v17, 0.0  ;;  %s308_s5 = sld [smem:[#allocation6 + $0x19]]  ;;  %v81_v28 = vstv %s301_s27 }
  0x1e   :  { %v61_v24 = vadd.f32 %v60_v19, %v49_v15  ;;  %v78_v25 = vadd.f32 %v77_v22, %v75_v21  ;;  %v85_v26 = vstv %s183_s28  ;;  %s189_s6 = sld [smem:[#allocation6 + $0x6]] }
  0x1f   :  { %v71_v27 = vmul.f32 %v70_v20, %v68_v23  ;;  %v86_v29 = vmul.f32 %v85_v26, %v295_v0  ;;  %v88_v30 = vstv %s184_s29  ;;  %s190_s7 = sld [smem:[#allocation6 + $0x10]] }
  0x20   :  { %v79_v31 = vmax.f32 %v78_v25, 0.0  ;;  %s312_s8 = sld [smem:[#allocation6 + $0x1a]]  ;;  %v92_v36 = vstv %s304_s30 }
  0x21   :  { %v72_v32 = vadd.f32 %v71_v27, %v61_v24  ;;  %v89_v33 = vadd.f32 %v88_v30, %v86_v29  ;;  %v96_v34 = vstv %s186_s3  ;;  %s192_s9 = sld [smem:[#allocation6 + $0x7]] }
  0x22   :  { %v82_v35 = vmul.f32 %v81_v28, %v79_v31  ;;  %v97_v37 = vmul.f32 %v96_v34, %v295_v0  ;;  %v99_v38 = vstv %s187_s4  ;;  %s193_s10 = sld [smem:[#allocation6 + $0x11]] }
  0x23   :  { %v90_v39 = vmax.f32 %v89_v33, 0.0  ;;  %s316_s11 = sld [smem:[#allocation6 + $0x1b]]  ;;  %v103_v44 = vstv %s308_s5 }
  0x24   :  { %v83_v40 = vadd.f32 %v82_v35, %v72_v32  ;;  %v100_v41 = vadd.f32 %v99_v38, %v97_v37  ;;  %v107_v42 = vstv %s189_s6  ;;  %s195_s12 = sld [smem:[#allocation6 + $0x8]] }
  0x25   :  { %v93_v43 = vmul.f32 %v92_v36, %v90_v39  ;;  %v108_v45 = vmul.f32 %v107_v42, %v295_v0  ;;  %v110_v46 = vstv %s190_s7  ;;  %s196_s13 = sld [smem:[#allocation6 + $0x12]] }
  0x26   :  { %v101_v47 = vmax.f32 %v100_v41, 0.0  ;;  %s320_s14 = sld [smem:[#allocation6 + $0x1c]]  ;;  %v114_v52 = vstv %s312_s8 }
  0x27   :  { %v94_v48 = vadd.f32 %v93_v43, %v83_v40  ;;  %v111_v49 = vadd.f32 %v110_v46, %v108_v45  ;;  %v118_v50 = vstv %s192_s9  ;;  %s198_s15 = sld [smem:[#allocation6 + $0x9]] }
  0x28   :  { %v104_v51 = vmul.f32 %v103_v44, %v101_v47  ;;  %v119_v53 = vmul.f32 %v118_v50, %v295_v0  ;;  %v121_v54 = vstv %s193_s10  ;;  %s199_s16 = sld [smem:[#allocation6 + $0x13]] }
  0x29   :  { %v112_v55 = vmax.f32 %v111_v49, 0.0  ;;  %s200_s17 = sld [smem:[#allocation6 + $0x1d]]  ;;  %v125_v60 = vstv %s316_s11 }
  0x2a   :  { %v105_v56 = vadd.f32 %v104_v51, %v94_v48  ;;  %v122_v57 = vadd.f32 %v121_v54, %v119_v53  ;;  %v129_v58 = vstv %s195_s12  ;;  %s201_s18 = sld [smem:[#allocation6 + $0x1e]] }
  0x2b   :  { %v115_v59 = vmul.f32 %v114_v52, %v112_v55  ;;  %v130_v61 = vmul.f32 %v129_v58, %v295_v0  ;;  %v132_v62 = vstv %s196_s13 }
  0x2c   :  { %v123_v63 = vmax.f32 %v122_v57, 0.0  ;;  %v136_v5 = vstv %s320_s14 }
  0x2d   :  { %v116_v1 = vadd.f32 %v115_v59, %v105_v56  ;;  %v133_v2 = vadd.f32 %v132_v62, %v130_v61  ;;  %v140_v3 = vstv %s198_s15 }
  0x2e   :  { %v126_v4 = vmul.f32 %v125_v60, %v123_v63  ;;  %v141_v6 = vmul.f32 %v140_v3, %v295_v0  ;;  %v143_v7 = vstv %s199_s16 }
  0x2f   :  { %v134_v8 = vmax.f32 %v133_v2, 0.0  ;;  %v147_v12 = vstv %s200_s17 }
  0x30   :  { %v127_v9 = vadd.f32 %v126_v4, %v116_v1  ;;  %v144_v10 = vadd.f32 %v143_v7, %v141_v6  ;;  %v151_v16 = vstv %s201_s18 }
  0x31   :  { %v137_v11 = vmul.f32 %v136_v5, %v134_v8 }
  0x32   :  { %v145_v13 = vmax.f32 %v144_v10, 0.0 }
  0x33   :  { %v138_v14 = vadd.f32 %v137_v11, %v127_v9 }
  0x34   :  { %v148_v15 = vmul.f32 %v147_v12, %v145_v13 }
  0x36   :  { %v149_v17 = vadd.f32 %v148_v15, %v138_v14 }
  0x38   :  { %v152_v18 = vadd.f32 %v151_v16, %v149_v17 }
  0x3a   :  { %153 = vst [vmem:[#allocation7] sm:$0xff] %v152_v18 }
  0x3b   :  { %164 = dma.vmem_to_hbm [thread:$0]  %s160_s0, 128, %s162_s22, [#allocation4]  }
  0x3c   :  { %269 = dma.done.wait [#allocation4], 128  }
  0x3d   :  { %270 = vsyncadd [#allocation4], 4294967168 }
  0x3e   :  { %169 = vsyncpa [#allocation3], 1 }
  0x3f   :  { %170 = vsyncpa [#allocation4], 1 }
  0x40   :  { %171 = vsyncpa [#allocation5], 1 }

</bundles_post_ra>
